<compile_context>
chip_gen: v7x
topology: tpu7x:2x2x1
jax: 0.10.0
libtpu: 0.0.40
codegen_flags: <defaults>
</compile_context>

<pallas_src>
import jax
import jax.numpy as jnp
from jax.experimental import pallas as pl
from jax.experimental.pallas import tpu as pltpu


_NEG_LARGE = float(jnp.finfo(jnp.float32).min)   # max-neutral, finite (no NaN risk)


def _round_up(x, m):
    return ((x + m - 1) // m) * m


# ----------------------------------------------------------------------------
# Kernel factory: closes over static sizes (C, tile width, true HW).
# ----------------------------------------------------------------------------
def _make_kernel(c, t_hw, hw, pool_w):
    rem = hw % t_hw                      # 0  => no in-kernel masking compiled in
    n_chunks = (t_hw + 127) // 128       # static 128-lane chunks per tile

    def kernel(x_ref, w1_ref, w2_ref, o_ref, pool_ref):
        s = pl.program_id(1)

        @pl.when(s == 0)
        def _init():
            pool_ref[...] = jnp.full_like(pool_ref, _NEG_LARGE)

        if rem != 0:
            lane = jax.lax.broadcasted_iota(jnp.int32, (c, pool_w), 1)
            base = s * t_hw

        # Pure-VPU running max: fold each 128-lane chunk of the [C, t_hw] tile
        # into the resident [C, pool_w] lane-partial accumulator.
        part = pool_ref[...]                                       # [c, pool_w]
        for k in range(n_chunks):
            lo = k * 128
            hi = min(lo + 128, t_hw)
            chunk = x_ref[:, lo:hi].astype(jnp.float32)            # [c, <=128]
            if rem != 0:
                valid = (base + lo + lane) < hw
                chunk = jnp.where(valid, chunk, _NEG_LARGE)
            part = jnp.maximum(part, chunk)
        pool_ref[...] = part

        @pl.when(s == pl.num_programs(1) - 1)
        def _epilogue():
            # Collapse lane partials -> per-channel max (once per batch).
            pooled = jnp.max(pool_ref[...], axis=1, keepdims=True)   # [c, 1]
            pooled = jnp.broadcast_to(pooled, (c, 128))              # lane-dense
            h = jnp.dot(w1_ref[...], pooled,
                        preferred_element_type=jnp.float32)          # [hid_pad, 128]
            h = jnp.maximum(h, 0.0)                                  # ReLU
            y = jnp.dot(w2_ref[...], h,
                        preferred_element_type=jnp.float32)          # [c, 128]
            y = 1.0 / (1.0 + jnp.exp(-y))                            # sigmoid (EUP exp)
            o_ref[...] = y[:, 0:1].astype(o_ref.dtype)               # [c, 1]

    return kernel


# ----------------------------------------------------------------------------
# Wrapper: free reshape to [N, C, HW], weight prep, pallas_call, output reshape.
# ----------------------------------------------------------------------------
def channel_attention(x, w1, w2):
    """x: [N, C, H, W]; w1: [hidden, C, 1, 1]; w2: [C, hidden, 1, 1]."""
    n, c, hh, ww = x.shape
    hidden = w1.shape[0]
    hw = hh * ww
    bytes_per_el = jnp.dtype(x.dtype).itemsize

    # Spatial tile (lane axis): ~1-2 MiB per block, multiple of 128 lanes.
    if hw < 128:
        t_hw = hw                                   # full-extent block (legal)
    else:
        target_bytes = 2 * 1024 * 1024
        t_hw = (target_bytes // max(1, c * bytes_per_el)) // 128 * 128
        t_hw = max(128, min(t_hw, 4096))
        t_hw = min(t_hw, _round_up(hw, 128))
    pool_w = min(t_hw, 128)

    hid_pad = _round_up(hidden, 128)

    # Free reshape; x stays in native layout & dtype in HBM (read exactly once).
    x_nchw = x.reshape(n, c, hw)

    # Tiny 1x1-conv weights as f32 matmul operands; hidden zero-padded to 128
    # (zero rows/cols are exactly neutral through ReLU / fc2).
    w1m = jnp.pad(w1.astype(jnp.float32).reshape(hidden, c),
                  ((0, hid_pad - hidden), (0, 0)))                 # [hid_pad, c]
    w2m = jnp.pad(w2.astype(jnp.float32).reshape(c, hidden),
                  ((0, 0), (0, hid_pad - hidden)))                 # [c, hid_pad]

    grid = (n, pl.cdiv(hw, t_hw))

    # VMEM budget: double-buffered x block + double-buffered weights + scratch.
    x_block_bytes = c * t_hw * bytes_per_el
    w_bytes = 2 * 2 * hid_pad * c * 4
    vmem_limit = int(min(100 * 2**20,
                         max(16 * 2**20, 2 * x_block_bytes + w_bytes + 4 * 2**20)))

    cost = pl.CostEstimate(
        flops=2 * n * 2 * c * hid_pad * 128,
        transcendentals=n * c * 128,
        bytes_accessed=n * c * hw * bytes_per_el
                       + 2 * hid_pad * c * 4
                       + n * c * bytes_per_el,
    )

    kernel = _make_kernel(c, t_hw, hw, pool_w)

    out = pl.pallas_call(
        kernel,
        out_shape=jax.ShapeDtypeStruct((n, c, 1), x.dtype),
        grid_spec=pltpu.PrefetchScalarGridSpec(
            num_scalar_prefetch=0,
            grid=grid,
            in_specs=[
                pl.BlockSpec((None, c, t_hw), lambda b, s: (b, 0, s)),
                pl.BlockSpec((hid_pad, c), lambda b, s: (0, 0)),
                pl.BlockSpec((c, hid_pad), lambda b, s: (0, 0)),
            ],
            out_specs=pl.BlockSpec((None, c, 1), lambda b, s: (b, 0, 0)),
            scratch_shapes=[pltpu.VMEM((c, pool_w), jnp.float32)],
        ),
        compiler_params=pltpu.CompilerParams(
            # TODO(synk): for v7x small-N inference, add a parallel HW split with
            # a cross-core partial-max combine so both TensorCores stay busy.
            dimension_semantics=("parallel", "arbitrary"),
            vmem_limit_bytes=vmem_limit,
        ),
        cost_estimate=cost,
    )(x_nchw, w1m, w2m)

    return out.reshape(n, c, 1, 1)


# ----------------------------------------------------------------------------
# Pure-JAX reference (mirrors the PyTorch module exactly).
# ----------------------------------------------------------------------------
def _ref_forward(x, w1, w2):
    pooled = jnp.max(x, axis=(2, 3), keepdims=True)                 # AdaptiveMaxPool2d(1)
    h = jax.lax.conv_general_dilated(
        pooled, w1, window_strides=(1, 1), padding="VALID",
        dimension_numbers=("NCHW", "OIHW", "NCHW"))
    h = jnp.maximum(h, 0.0)
    y = jax.lax.conv_general_dilated(
        h, w2, window_strides=(1, 1), padding="VALID",
        dimension_numbers=("NCHW", "OIHW", "NCHW"))
    return jax.nn.sigmoid(y)


if __name__ == "__main__":
    # ChannelAttention(in_planes=64) -> hidden = in_planes // 16 = 4
    key = jax.random.PRNGKey(0)
    k_x, k_w1, k_w2 = jax.random.split(key, 3)

    N, C, H, W = 2, 64, 16, 16
    HIDDEN = C // 16

    x = jax.random.normal(k_x, (N, C, H, W), dtype=jnp.float32)
    w1 = jax.random.normal(k_w1, (HIDDEN, C, 1, 1), dtype=jnp.float32) * 0.1
    w2 = jax.random.normal(k_w2, (C, HIDDEN, 1, 1), dtype=jnp.float32) * 0.1

    out = jax.block_until_ready(channel_attention(x, w1, w2))

    ref = _ref_forward(x, w1, w2)
    assert out.shape == ref.shape == (N, C, 1, 1)
    max_err = float(jnp.max(jnp.abs(out - ref)))
    assert jnp.allclose(out, ref, atol=1e-5, rtol=1e-5), f"max abs err {max_err}"

    print("KERNEL_OK")
</pallas_src>

<mosaic_0001>
module attributes {stable_mosaic.version = 11 : i64} {
  func.func @kernel(%arg0: i32, %arg1: i32, %arg2: memref<1x64x256xf32, #tpu.memory_space<vmem>>, %arg3: memref<128x64xf32, #tpu.memory_space<vmem>>, %arg4: memref<64x128xf32, #tpu.memory_space<vmem>>, %arg5: memref<1x64x1xf32, #tpu.memory_space<vmem>>, %arg6: memref<64x128xf32, #tpu.memory_space<vmem>>) attributes {dimension_semantics = [#tpu.dimension_semantics<parallel>, #tpu.dimension_semantics<arbitrary>], iteration_bounds = array<i64: 2, 1>, scalar_prefetch = 0 : i64, scratch_operands = 1 : i64, tpu.core_type = #tpu.core_type<tc>, window_params = [{transform_indices = @transform_0, window_bounds = array<i64: 1, 64, 256>}, {pipeline_mode = #tpu.pipeline_mode<synchronous>, transform_indices = @transform_1, window_bounds = array<i64: 128, 64>}, {pipeline_mode = #tpu.pipeline_mode<synchronous>, transform_indices = @transform_2, window_bounds = array<i64: 64, 128>}, {transform_indices = @transform_3, window_bounds = array<i64: 1, 64, 1>}]} {
    %c0_i32 = arith.constant 0 : i32
    %0 = arith.cmpi eq, %arg1, %c0_i32 : i32
    %1 = arith.extui %0 : i1 to i32
    %c0_i32_0 = arith.constant 0 : i32
    %2 = arith.cmpi ne, %1, %c0_i32_0 : i32
    scf.if %2 {
      %cst = arith.constant -3.40282347E+38 : f32
      %14 = vector.broadcast %cst : f32 to vector<64x128xf32>
      %c0_11 = arith.constant 0 : index
      %c0_12 = arith.constant 0 : index
      %15 = vector.load %arg6[%c0_11, %c0_12] : memref<64x128xf32, #tpu.memory_space<vmem>>, vector<64x128xf32>
      tpu.vector_store %arg6[%c0_11, %c0_12], %14 {strides = array<i32>} : memref<64x128xf32, #tpu.memory_space<vmem>>, vector<64x128xf32>,
    } else {
    }
    %c0 = arith.constant 0 : index
    %c0_1 = arith.constant 0 : index
    %3 = vector.load %arg6[%c0, %c0_1] : memref<64x128xf32, #tpu.memory_space<vmem>>, vector<64x128xf32>
    %c0_2 = arith.constant 0 : index
    %c0_3 = arith.constant 0 : index
    %c0_4 = arith.constant 0 : index
    %4 = vector.load %arg2[%c0_2, %c0_3, %c0_4] : memref<1x64x256xf32, #tpu.memory_space<vmem>>, vector<1x64x128xf32>
    %5 = vector.shape_cast %4 : vector<1x64x128xf32> to vector<64x128xf32>
    %6 = arith.maximumf %3, %5 : vector<64x128xf32>
    %c0_5 = arith.constant 0 : index
    %c0_6 = arith.constant 0 : index
    %c128 = arith.constant 128 : index
    %7 = vector.load %arg2[%c0_5, %c0_6, %c128] : memref<1x64x256xf32, #tpu.memory_space<vmem>>, vector<1x64x128xf32>
    %8 = vector.shape_cast %7 : vector<1x64x128xf32> to vector<64x128xf32>
    %9 = arith.maximumf %6, %8 : vector<64x128xf32>
    %c0_7 = arith.constant 0 : index
    %c0_8 = arith.constant 0 : index
    %10 = vector.load %arg6[%c0_7, %c0_8] : memref<64x128xf32, #tpu.memory_space<vmem>>, vector<64x128xf32>
    tpu.vector_store %arg6[%c0_7, %c0_8], %9 {strides = array<i32>} : memref<64x128xf32, #tpu.memory_space<vmem>>, vector<64x128xf32>,
    %c0_i32_9 = arith.constant 0 : i32
    %11 = arith.cmpi eq, %arg1, %c0_i32_9 : i32
    %12 = arith.extui %11 : i1 to i32
    %c0_i32_10 = arith.constant 0 : i32
    %13 = arith.cmpi ne, %12, %c0_i32_10 : i32
    scf.if %13 {
      %c0_11 = arith.constant 0 : index
      %c0_12 = arith.constant 0 : index
      %14 = vector.load %arg6[%c0_11, %c0_12] : memref<64x128xf32, #tpu.memory_space<vmem>>, vector<64x128xf32>
      %cst = arith.constant dense<0xFF800000> : vector<64xf32>
      %15 = vector.multi_reduction <maximumf>, %14, %cst [1] : vector<64x128xf32> to vector<64xf32>
      %16 = vector.shape_cast %15 : vector<64xf32> to vector<64x1xf32>
      %17 = vector.shape_cast %16 : vector<64x1xf32> to vector<64x1xf32>
      %18 = vector.broadcast %17 : vector<64x1xf32> to vector<64x128xf32>
      %c0_13 = arith.constant 0 : index
      %c0_14 = arith.constant 0 : index
      %19 = vector.load %arg3[%c0_13, %c0_14] : memref<128x64xf32, #tpu.memory_space<vmem>>, vector<128x64xf32>
      %cst_15 = arith.constant dense<0.000000e+00> : vector<128x128xf32>
      %20 = tpu.matmul %19, %18, %cst_15 {dimension_numbers = #tpu.dot_dimension_numbers<[1], [0], [0], [1], [0, 0, 1, 1], [], []>} : vector<128x64xf32>, vector<64x128xf32>, vector<128x128xf32> -> vector<128x128xf32>
      %cst_16 = arith.constant 0.000000e+00 : f32
      %21 = vector.broadcast %cst_16 : f32 to vector<128x128xf32>
      %22 = arith.maximumf %20, %21 : vector<128x128xf32>
      %c0_17 = arith.constant 0 : index
      %c0_18 = arith.constant 0 : index
      %23 = vector.load %arg4[%c0_17, %c0_18] : memref<64x128xf32, #tpu.memory_space<vmem>>, vector<64x128xf32>
      %cst_19 = arith.constant dense<0.000000e+00> : vector<64x128xf32>
      %24 = tpu.matmul %23, %22, %cst_19 {dimension_numbers = #tpu.dot_dimension_numbers<[1], [0], [0], [1], [0, 0, 1, 1], [], []>} : vector<64x128xf32>, vector<128x128xf32>, vector<64x128xf32> -> vector<64x128xf32>
      %cst_20 = arith.constant 0.000000e+00 : f32
      %25 = vector.broadcast %cst_20 : f32 to vector<64x128xf32>
      %26 = arith.subf %25, %24 : vector<64x128xf32>
      %27 = math.exp %26 : vector<64x128xf32>
      %cst_21 = arith.constant 1.000000e+00 : f32
      %28 = vector.broadcast %cst_21 : f32 to vector<64x128xf32>
      %29 = arith.addf %28, %27 : vector<64x128xf32>
      %cst_22 = arith.constant 1.000000e+00 : f32
      %30 = vector.broadcast %cst_22 : f32 to vector<64x128xf32>
      %31 = arith.divf %30, %29 : vector<64x128xf32>
      %32 = vector.extract_strided_slice %31 {offsets = [0, 0], sizes = [64, 1], strides = [1, 1]} : vector<64x128xf32> to vector<64x1xf32>
      %c0_23 = arith.constant 0 : index
      %c0_24 = arith.constant 0 : index
      %c0_25 = arith.constant 0 : index
      %33 = vector.load %arg5[%c0_23, %c0_24, %c0_25] : memref<1x64x1xf32, #tpu.memory_space<vmem>>, vector<1x64x1xf32>
      %34 = vector.shape_cast %33 : vector<1x64x1xf32> to vector<64x1xf32>
      %35 = vector.shape_cast %32 : vector<64x1xf32> to vector<1x64x1xf32>
      tpu.vector_store %arg5[%c0_23, %c0_24, %c0_25], %35 {strides = array<i32>} : memref<1x64x1xf32, #tpu.memory_space<vmem>>, vector<1x64x1xf32>,
    } else {
    }
    return
  }
  func.func @transform_0(%arg0: i32, %arg1: i32) -> (i32, i32, i32) {
    %c0_i32 = arith.constant 0 : i32
    %c0_i32_0 = arith.constant 0 : i32
    return %arg0, %c0_i32, %arg1 : i32, i32, i32
  }
  func.func @transform_1(%arg0: i32, %arg1: i32) -> (i32, i32) {
    %c0_i32 = arith.constant 0 : i32
    %c0_i32_0 = arith.constant 0 : i32
    %c0_i32_1 = arith.constant 0 : i32
    return %c0_i32, %c0_i32_0 : i32, i32
  }
  func.func @transform_2(%arg0: i32, %arg1: i32) -> (i32, i32) {
    %c0_i32 = arith.constant 0 : i32
    %c0_i32_0 = arith.constant 0 : i32
    %c0_i32_1 = arith.constant 0 : i32
    return %c0_i32, %c0_i32_0 : i32, i32
  }
  func.func @transform_3(%arg0: i32, %arg1: i32) -> (i32, i32, i32) {
    %c0_i32 = arith.constant 0 : i32
    %c0_i32_0 = arith.constant 0 : i32
    %c0_i32_1 = arith.constant 0 : i32
    return %arg0, %c0_i32, %c0_i32_0 : i32, i32, i32
  }
}

</mosaic_0001>

<bundles_post_ra>
// kernel: tpu_custom_call.1
= control target key start
LH: loop header
LB: loop body
LE: loop exit
PB: predicated region body
PF: predicated region fallthrough
CT: control target
= control target key end

     0   :  { %8 = vsyncpa [#allocation4], 0  ;;  %s1412_s0 = inlined_call_operand.hbm [shape: f32[2,64,256], index: 0, kind: input, shape index: {}]   ;;  %s1413_s1 = inlined_call_operand.vmem [shape: f32[128,64], index: 1, kind: input, shape index: {}]   ;;  %s1414_s2 = inlined_call_operand.vmem [shape: f32[64,128], index: 2, kind: input, shape index: {}]   ;;  %s1415_s3 = inlined_call_operand.vmem [shape: f32[2,64,1], index: 3, kind: output, shape index: {}]  }
   0x1   :  { %10 = vsyncpa [#allocation4 + $0x1], 0  ;;  %s1174_s12 = smov 0   ;;  %s1176_s13 = smov 0  }
   0x2   :  { %s1178_s14 = smov 0   ;;  %s1180_s15 = smov 0  }
   0x3   :  { %s1182_s16 = smov 0   ;;  %s1184_s17 = smov 0  }
   0x4 LB: > { %s769_s18 = sadd.s32 4294967295, %s1149_s17   ;;  %s28_s19 = sadd.s32 1, %s1145_s16  ;;  %s1149_s17 = sphi %s1184_s17, %s16_s17   ;;  %s1145_s16 = sphi %s1182_s16, %s1423_s16   ;;  %s1141_s15 = sphi %s1180_s15, %s1422_s15   ;;  %s1137_s14 = sphi %s1178_s14, %s1421_s14   ;;  %s1133_s13 = sphi %s1176_s13, %s1420_s13   ;;  %s1129_s12 = sphi %s1174_s12, %s1419_s12  }
   0x5   : > { %p30_p0 = scmp.ge.s32.totalorder %s28_s19, 2  ;;  %s37_s20 = sadd.s32 1, %s1137_s14 }
   0x6   : > { %p44_p1 = scmp.ne.s32.totalorder %s1137_s14, %s1133_s13  ;;  %p45_p2 = scmp.eq.s32.totalorder %s1149_s17, 0 }
   0x7   : > { %s1425_s19 = smov (%p30_p0, %s28_s19), 0  ;;  %p50_p4 = scmp.ne.s32.totalorder %s1133_s13, %s1129_s12 }
   0x8   : > { %p1210_p3 = por %p45_p2, %p44_p1  ;;  %s32_s22 = ssub.s32 %s1145_s16, %s1425_s19 }
   0x9   : > { %p51_p5 = scmp.eq.s32.totalorder %s769_s18, 0  ;;  %p35_p6 = scmp.eq.s32.totalorder %s32_s22, 0 }
   0xa   : > { %p986_p8 = scmp.lt.s32.totalorder %s1149_s17, 2  ;;  %s148_s25 = sand.u32 1, %s1137_s14  }
   0xb   : > { %p1217_p7 = por %p51_p5, %p50_p4  ;;  %s798_s26 = sshll.u32 %s1145_s16, 11 }
   0xc   : > { %s1223_s24 = scalar_select %p35_p6, %s1137_s14, %s37_s20  }
   0xd   : > { %s773_s27 = sshll.u32 %s148_s25, 7  ;;  %s1230_s30 = scalar_lea.hbm %s1412_s0, %s798_s26 }
   0xe   : > { %s152_s4 = scalar_lea.vmem [#allocation3], %s773_s27  ;;  %p1234_p9 = pnand %p986_p8, %p1210_p3 }
   0xf   : > { %s161_s5 = sshll.u32 %s152_s4, 4  ;;  %s1240_s7 = scalar_lea.sflag [#allocation4], %s148_s25  ;;  %s1238_s5 = int_to_ptr.vmem [resolvable:$true] %s161_s5 }
  0x10   : > { %s1069_s8 = scalar_lea.hbm %s1230_s30, 2048  ;;  %p1071_p11 = pneg %p1234_p9 }
  0x11   : > { %p1070_p10 = scmp.ne.s32.totalorder %s1230_s30, %s1069_s8  ;;  %s1074_s11 = scalar_lea.hbm %s1412_s0, 4096 }
  0x12   : > { %p1075_p0 = scmp.lt.u32.totalorder %s1230_s30, %s1412_s0  ;;  %p1076_p1 = scmp.lt.u32.totalorder %s1074_s11, %s1069_s8 }
  0x13   : > { %p1072_p12 = pnand %p1071_p11, %p1070_p10  ;;  %p1078_p3 = scmp.lt.u32.totalorder %s1069_s8, %s1230_s30 }
  0x14   : > { %p1077_p2 = por %p1076_p1, %p1075_p0 }
  0x15   : > { %p1073_p13 = pneg %p1072_p12 }
  0x16   : > { %p1079_p4 = por %p1078_p3, %p1077_p2 }
  0x18   : > { %p1080_p5 = pnand %p1079_p4, %p1073_p13 }
  0x1a   : > { %1083 = shalt.err (!%p1080_p5)
}
  0x1b   : > { %s1084_s20 = scalar_lea.vmem %s1238_s5, 2048  ;;  %s1151_s21 = smov [#allocation3]  }
  0x1c   : > { %p1085_p6 = scmp.ne.s32.totalorder %s1238_s5, %s1084_s20  ;;  %s1089_s22 = sshll.u32 %s1151_s21, 4  ;;  %s1090_s22 = int_to_ptr.vmem [resolvable:$false] %s1089_s22 }
  0x1d   : > { %s1091_s25 = scalar_lea.vmem %s1090_s22, 4096  ;;  %p1092_p12 = scmp.lt.s32.totalorder %s1238_s5, %s1090_s22 }
  0x1e   : > { %p1087_p8 = pnand %p1085_p6, %p1071_p11  ;;  %p1093_p0 = scmp.lt.s32.totalorder %s1091_s25, %s1084_s20 }
  0x20   : > { %p1088_p10 = pneg %p1087_p8  ;;  %p1094_p1 = por %p1093_p0, %p1092_p12 }
  0x22   : > { %p1095_p2 = pnand %p1094_p1, %p1088_p10 }
  0x24   : > { %1098 = shalt.err (!%p1095_p2)
}
  0x25   : > { %s1152_s26 = smov 256   ;;  %s1153_s27 = smov 16  }
  0x26   : > { %985 = dma.hbm_to_vmem [thread:$0]  (!%p1234_p9), %s1230_s30, 2048, %s1238_s5, %s1240_s7, %s1152_s26, %s1152_s26, %s1153_s27  }
  0x27   : > { %p776_p11 = scmp.ge.s32.totalorder %s1149_s17, 1  ;;  %p169_p13 = scmp.lt.s32.totalorder %s1149_s17, 3 }
  0x29   : > { %p170_p3 = pnand %p776_p11, %p169_p13 }
  0x2a   : > { %s175_s28 = sand.u32 (!%p170_p3), 1, %s1133_s13  }
  0x2b   : > { %173 = sbr.rel (%p170_p3) target bundleno = 726 (0x2d6), region = 32  ;;  %s777_s29 = sshll.u32 (!%p170_p3), %s175_s28, 7 }
  0x2c   : > { %s176_s4 = scalar_lea.sflag (!%p170_p3), [#allocation4], %s175_s28  ;;  %s1271_s8 = scalar_lea.vmem (!%p170_p3), [#allocation3], %s777_s29 }
  0x32   : > { %1124 = dma.done.wait (%p1217_p7), %s176_s4, 2048  }
  0x33   : > { %1126 = vsyncadd (%p1217_p7), %s176_s4, 4294965248  ;;  %v230_v0 = vld [vmem:[%s1271_s8 + $0x20] sm:$0xff]  ;;  %v246_v1 = vld [vmem:[%s1271_s8 + $0x28] sm:$0xff]  ;;  %vm311_vm0 = vcmask 523264   ;;  %p203_p7 = scmp.lt.s32.totalorder %s1141_s15, 1  ;;  %vm682_vm1 = vcmask 7168  }
  0x34   : > { %v228_v2 = vld [vmem:[%s1271_s8] sm:$0xff]  ;;  %v238_v3 = vmax.f32 %v230_v0, -3.4028235e+38  ;;  %v244_v5 = vld [vmem:[%s1271_s8 + $0x8] sm:$0xff]  ;;  %v231_v6 = vld [vmem:[%s1271_s8 + $0x30] sm:$0xff] }
  0x35   : > { %v236_v4 = vmax.f32 %v228_v2, -3.4028235e+38  ;;  %v239_v7 = vmax.f32 %v231_v6, -3.4028235e+38  ;;  %v247_v8 = vld [vmem:[%s1271_s8 + $0x38] sm:$0xff]  ;;  %v229_v9 = vld [vmem:[%s1271_s8 + $0x10] sm:$0xff] }
  0x36   : > { %v245_v10 = vld [vmem:[%s1271_s8 + $0x18] sm:$0xff]  ;;  %v254_v11 = vmax.f32 %v238_v3, %v246_v1  ;;  %v237_v13 = vmax.f32 %v229_v9, -3.4028235e+38  ;;  %v233_v14 = vld [vmem:[%s1271_s8 + $0x50] sm:$0xff]  ;;  %v232_v15 = vld [vmem:[%s1271_s8 + $0x40] sm:$0xff]  ;;  %s1427_s15 = smov (!%p203_p7, %s1141_s15), 1 }
  0x37   : > { %v252_v12 = vmax.f32 %v236_v4, %v244_v5  ;;  %v255_v16 = vmax.f32 %v239_v7, %v247_v8  ;;  %v241_v18 = vmax.f32 %v233_v14, -3.4028235e+38  ;;  %v249_v19 = vld [vmem:[%s1271_s8 + $0x58] sm:$0xff]  ;;  %v240_v20 = vmax.f32 %v232_v15, -3.4028235e+38  ;;  %v248_v21 = vld [vmem:[%s1271_s8 + $0x48] sm:$0xff] }
  0x38   : > { %283 = vmax.xlane.f32.xlu1 %v254_v11  ;;  %v253_v17 = vmax.f32 %v237_v13, %v245_v10  ;;  %v235_v22 = vld [vmem:[%s1271_s8 + $0x70] sm:$0xff]  ;;  %v234_v23 = vld [vmem:[%s1271_s8 + $0x60] sm:$0xff]  ;;  %v251_v28 = vld [vmem:[%s1271_s8 + $0x78] sm:$0xff]  ;;  %s799_s12 = sshll.u32 %s1427_s15, 6 }
  0x39   : > { %279 = vmax.xlane.f32.xlu0 %v252_v12  ;;  %v257_v24 = vmax.f32 %v241_v18, %v249_v19  ;;  %v256_v25 = vmax.f32 %v240_v20, %v248_v21  ;;  %v243_v26 = vmax.f32 %v235_v22, -3.4028235e+38  ;;  %v242_v27 = vmax.f32 %v234_v23, -3.4028235e+38  ;;  %v250_v29 = vld [vmem:[%s1271_s8 + $0x68] sm:$0xff]  ;;  %v295_v32 = vld [vmem:[%s1413_s1] sm:$0xff]  ;;  %s207_s21 = scalar_lea.vmem %s1415_s3, %s799_s12 }
  0x3a   : > { %864 = vmatprep.mubr.msk.f32.mxu0 %vm311_vm0, %v295_v32  ;;  %v296_v45 = vld [vmem:[%s1413_s1 + $0x8] sm:$0xff]  ;;  %v297_v46 = vld [vmem:[%s1413_s1 + $0x10] sm:$0xff]  ;;  %v298_v47 = vld [vmem:[%s1413_s1 + $0x18] sm:$0xff] }
  0x3b   : > { %v259_v30 = vmax.f32 %v243_v26, %v251_v28  ;;  %v258_v31 = vmax.f32 %v242_v27, %v250_v29  ;;  %v299_v48 = vld [vmem:[%s1413_s1 + $0x20] sm:$0xff]  ;;  %v300_v49 = vld [vmem:[%s1413_s1 + $0x28] sm:$0xff]  ;;  %v301_v50 = vld [vmem:[%s1413_s1 + $0x30] sm:$0xff] }
  0x3c   : > { %285 = vmax.xlane.f32.xlu1 %v255_v16  ;;  %v302_v51 = vld [vmem:[%s1413_s1 + $0x38] sm:$0xff]  ;;  %v303_v52 = vld [vmem:[%s1413_s1 + $0x40] sm:$0xff]  ;;  %v304_v53 = vld [vmem:[%s1413_s1 + $0x48] sm:$0xff] }
  0x3d   : > { %281 = vmax.xlane.f32.xlu0 %v253_v17  ;;  %v305_v54 = vld [vmem:[%s1413_s1 + $0x50] sm:$0xff]  ;;  %v306_v55 = vld [vmem:[%s1413_s1 + $0x58] sm:$0xff]  ;;  %v307_v56 = vld [vmem:[%s1413_s1 + $0x60] sm:$0xff] }
  0x3e   : > { %v308_v57 = vld [vmem:[%s1413_s1 + $0x68] sm:$0xff]  ;;  %v309_v58 = vld [vmem:[%s1413_s1 + $0x70] sm:$0xff]  ;;  %v310_v59 = vld [vmem:[%s1413_s1 + $0x78] sm:$0xff] }
  0x3f   : > { %v521_v60 = vld [vmem:[%s1414_s2] sm:$0xff] }
  0x40   : > { %289 = vmax.xlane.f32.xlu1 %v257_v24  ;;  %920 = vmatprep.mubr.f32.mxu1 %v521_v60 }
  0x41   : > { %287 = vmax.xlane.f32.xlu0 %v256_v25 }
  0x44   : > { %293 = vmax.xlane.f32.xlu1 %v259_v30 }
  0x45   : > { %291 = vmax.xlane.f32.xlu0 %v258_v31 }
  0xc5   : > { %v284_v33 = vpop.xlane.xlu1 %283 }
  0xc6   : > { %v280_v34 = vpop.xlane.xlu0 %279 }
  0xc9   : > { %v286_v35 = vpop.xlane.xlu1 %285 }
  0xca   : > { %v282_v36 = vpop.xlane.xlu0 %281  ;;  %v936_v38 = vpack.c.bf16 %v286_v35, %v284_v33 }
  0xcb   : > { %v932_v37 = vpack.c.bf16 %v282_v36, %v280_v34 }
  0xcd   : > { %933 = vmatprep.subr.bf16.mxu0 %v932_v37  ;;  %v290_v39 = vpop.xlane.xlu1 %289 }
  0xce   : > { %935 = vmatpush3.bf16.msra.mxu0 %v932_v37  ;;  %v288_v40 = vpop.xlane.xlu0 %287  ;;  %v522_v37 = vld [vmem:[%s1414_s2 + $0x8] sm:$0xff] }
  0xcf   : > { %937 = vmatprep.subr.bf16.mxu0 %v936_v38  ;;  %v940_v41 = vpack.c.bf16 %v290_v39, %v288_v40  ;;  %v524_v39 = vld [vmem:[%s1414_s2 + $0x18] sm:$0xff]  ;;  %v525_v40 = vld [vmem:[%s1414_s2 + $0x20] sm:$0xff] }
  0xd1   : > { %v294_v42 = vpop.xlane.xlu1 %293 }
  0xd2   : > { %939 = vmatpush3.bf16.msra.mxu0 %v936_v38  ;;  %v292_v43 = vpop.xlane.xlu0 %291  ;;  %v523_v38 = vld [vmem:[%s1414_s2 + $0x10] sm:$0xff] }
  0xd3   : > { %941 = vmatprep.subr.bf16.mxu0 %v940_v41  ;;  %v944_v44 = vpack.c.bf16 %v294_v42, %v292_v43  ;;  %v527_v42 = vld [vmem:[%s1414_s2 + $0x30] sm:$0xff]  ;;  %v528_v43 = vld [vmem:[%s1414_s2 + $0x38] sm:$0xff] }
  0xd6   : > { %943 = vmatpush3.bf16.msra.mxu0 %v940_v41  ;;  %v526_v41 = vld [vmem:[%s1414_s2 + $0x28] sm:$0xff] }
  0xd7   : > { %945 = vmatprep.subr.bf16.mxu0 %v944_v44 }
  0xda   : > { %947 = vmatpush3.bf16.msra.mxu0 %v944_v44 }
  0xdd   : > { %865 = vmatmul.mubr.msk.f32.vlgmr.msra.gmra.mrb[0].mxu0 %vm311_vm0, %v296_v45 }
  0xde   : > { %867 = vmatprep.mubr.msk.f32.mxu0 %vm311_vm0, %v297_v46 }
  0xe1   : > { %868 = vmatmul.mubr.msk.f32.gmra.mrb[2].mxu0 %vm311_vm0, %v298_v47 }
  0xe2   : > { %870 = vmatprep.mubr.msk.f32.mxu0 %vm311_vm0, %v299_v48 }
  0xe5   : > { %871 = vmatmul.mubr.msk.f32.gmra.mrb[4].mxu0 %vm311_vm0, %v300_v49 }
  0xe6   : > { %873 = vmatprep.mubr.msk.f32.mxu0 %vm311_vm0, %v301_v50 }
  0xe9   : > { %874 = vmatmul.mubr.msk.f32.gmra.mrb[6].mxu0 %vm311_vm0, %v302_v51 }
  0xea   : > { %876 = vmatprep.mubr.msk.f32.mxu0 %vm311_vm0, %v303_v52 }
  0xed   : > { %877 = vmatmul.mubr.msk.f32.gmra.mrb[8].mxu0 %vm311_vm0, %v304_v53 }
  0xee   : > { %879 = vmatprep.mubr.msk.f32.mxu0 %vm311_vm0, %v305_v54 }
  0xf1   : > { %880 = vmatmul.mubr.msk.f32.gmra.mrb[10].mxu0 %vm311_vm0, %v306_v55 }
  0xf2   : > { %882 = vmatprep.mubr.msk.f32.mxu0 %vm311_vm0, %v307_v56 }
  0xf5   : > { %883 = vmatmul.mubr.msk.f32.gmra.mrb[12].mxu0 %vm311_vm0, %v308_v57 }
  0xf6   : > { %885 = vmatprep.mubr.msk.f32.mxu0 %vm311_vm0, %v309_v58 }
  0xf9   : > { %886 = vmatmul.mubr.msk.f32.gmra.mrb[14].mxu0 %vm311_vm0, %v310_v59 }
 0x1b0   : > { %v866_v61 = vpop.f32.mrb[0].mxu0 }
 0x1b1   : > { %v506_v62 = vmax.f32 %v866_v61, 0.0  ;;  %v426_v63 = vpop.f32.mrb[1].mxu0 }
 0x1b2   : > { %v505_v0 = vmax.f32 %v426_v63, 0.0 }
 0x1b4   : > { %v869_v1 = vpop.f32.mrb[2].mxu0  ;;  %v948_v2 = vpack.c.bf16 %v506_v62, %v505_v0 }
 0x1b5   : > { %v508_v3 = vmax.f32 %v869_v1, 0.0  ;;  %v436_v4 = vpop.f32.mrb[3].mxu0 }
 0x1b6   : > { %v507_v5 = vmax.f32 %v436_v4, 0.0  ;;  %949 = vmatprep.subr.bf16.mxu1 %v948_v2 }
 0x1b7   : > { %951 = vmatpush3.bf16.msra.mxu1 %v948_v2 }
 0x1b8   : > { %v952_v6 = vpack.c.bf16 %v508_v3, %v507_v5  ;;  %v872_v7 = vpop.f32.mrb[4].mxu0 }
 0x1b9   : > { %v510_v8 = vmax.f32 %v872_v7, 0.0  ;;  %v446_v9 = vpop.f32.mrb[5].mxu0 }
 0x1ba   : > { %v509_v10 = vmax.f32 %v446_v9, 0.0  ;;  %953 = vmatprep.subr.bf16.mxu1 %v952_v6 }
 0x1bb   : > { %955 = vmatpush3.bf16.msra.mxu1 %v952_v6 }
 0x1bc   : > { %v956_v11 = vpack.c.bf16 %v510_v8, %v509_v10  ;;  %v875_v12 = vpop.f32.mrb[6].mxu0 }
 0x1bd   : > { %v512_v13 = vmax.f32 %v875_v12, 0.0  ;;  %v456_v14 = vpop.f32.mrb[7].mxu0 }
 0x1be   : > { %v511_v15 = vmax.f32 %v456_v14, 0.0  ;;  %957 = vmatprep.subr.bf16.mxu1 %v956_v11 }
 0x1bf   : > { %959 = vmatpush3.bf16.msra.mxu1 %v956_v11 }
 0x1c0   : > { %v960_v16 = vpack.c.bf16 %v512_v13, %v511_v15  ;;  %v878_v17 = vpop.f32.mrb[8].mxu0 }
 0x1c1   : > { %v514_v18 = vmax.f32 %v878_v17, 0.0  ;;  %v466_v19 = vpop.f32.mrb[9].mxu0 }
 0x1c2   : > { %v513_v20 = vmax.f32 %v466_v19, 0.0  ;;  %961 = vmatprep.subr.bf16.mxu1 %v960_v16 }
 0x1c3   : > { %963 = vmatpush3.bf16.msra.mxu1 %v960_v16 }
 0x1c4   : > { %v964_v21 = vpack.c.bf16 %v514_v18, %v513_v20  ;;  %v881_v22 = vpop.f32.mrb[10].mxu0 }
 0x1c5   : > { %v516_v23 = vmax.f32 %v881_v22, 0.0  ;;  %v476_v24 = vpop.f32.mrb[11].mxu0 }
 0x1c6   : > { %v515_v25 = vmax.f32 %v476_v24, 0.0  ;;  %965 = vmatprep.subr.bf16.mxu1 %v964_v21 }
 0x1c7   : > { %967 = vmatpush3.bf16.msra.mxu1 %v964_v21 }
 0x1c8   : > { %v968_v26 = vpack.c.bf16 %v516_v23, %v515_v25  ;;  %v884_v27 = vpop.f32.mrb[12].mxu0 }
 0x1c9   : > { %v518_v28 = vmax.f32 %v884_v27, 0.0  ;;  %v486_v29 = vpop.f32.mrb[13].mxu0 }
 0x1ca   : > { %v517_v30 = vmax.f32 %v486_v29, 0.0  ;;  %969 = vmatprep.subr.bf16.mxu1 %v968_v26 }
 0x1cb   : > { %971 = vmatpush3.bf16.msra.mxu1 %v968_v26 }
 0x1cc   : > { %v972_v31 = vpack.c.bf16 %v518_v28, %v517_v30  ;;  %v887_v32 = vpop.f32.mrb[14].mxu0 }
 0x1cd   : > { %v520_v33 = vmax.f32 %v887_v32, 0.0  ;;  %v496_v34 = vpop.f32.mrb[15].mxu0 }
 0x1ce   : > { %v519_v35 = vmax.f32 %v496_v34, 0.0  ;;  %973 = vmatprep.subr.bf16.mxu1 %v972_v31 }
 0x1cf   : > { %975 = vmatpush3.bf16.msra.mxu1 %v972_v31 }
 0x1d0   : > { %v976_v36 = vpack.c.bf16 %v520_v33, %v519_v35 }
 0x1d2   : > { %977 = vmatprep.subr.bf16.mxu1 %v976_v36 }
 0x1d3   : > { %979 = vmatpush3.bf16.msra.mxu1 %v976_v36 }
 0x1d6   : > { %921 = vmatmul.mubr.f32.vlgmr.msra.gmra.mrb[0].mxu1 %v522_v37 }
 0x1d7   : > { %923 = vmatprep.mubr.f32.mxu1 %v523_v38 }
 0x1da   : > { %924 = vmatmul.mubr.f32.gmra.mrb[2].mxu1 %v524_v39 }
 0x1db   : > { %926 = vmatprep.mubr.f32.mxu1 %v525_v40 }
 0x1de   : > { %927 = vmatmul.mubr.f32.gmra.mrb[4].mxu1 %v526_v41 }
 0x1df   : > { %929 = vmatprep.mubr.f32.mxu1 %v527_v42 }
 0x1e2   : > { %930 = vmatmul.mubr.f32.gmra.mrb[6].mxu1 %v528_v43 }
 0x2a9   : > { %v922_v44 = vpop.f32.mrb[0].mxu1 }
 0x2aa   : > { %v635_v45 = vsub.f32 0.0, %v922_v44  ;;  %v595_v46 = vpop.f32.mrb[1].mxu1 }
 0x2ab   : > { %v634_v47 = vsub.f32 0.0, %v595_v46 }
 0x2ac   : > { %v644_v48 = vmul.f32 1.442695, %v635_v45 }
 0x2ad   : > { %v642_v49 = vmul.f32 1.442695, %v634_v47  ;;  %v925_v50 = vpop.f32.mrb[2].mxu1 }
 0x2ae   : > { %1037 = vpow2.f32 %v644_v48  ;;  %v637_v51 = vsub.f32 0.0, %v925_v50  ;;  %v605_v52 = vpop.f32.mrb[3].mxu1 }
 0x2af   : > { %1039 = vpow2.f32 %v642_v49  ;;  %v636_v53 = vsub.f32 0.0, %v605_v52 }
 0x2b0   : > { %v648_v54 = vmul.f32 1.442695, %v637_v51 }
 0x2b1   : > { %v646_v55 = vmul.f32 1.442695, %v636_v53  ;;  %v928_v56 = vpop.f32.mrb[4].mxu1 }
 0x2b2   : > { %1041 = vpow2.f32 %v648_v54  ;;  %v639_v57 = vsub.f32 0.0, %v928_v56  ;;  %v615_v58 = vpop.f32.mrb[5].mxu1 }
 0x2b3   : > { %1043 = vpow2.f32 %v646_v55  ;;  %v638_v59 = vsub.f32 0.0, %v615_v58 }
 0x2b4   : > { %v652_v60 = vmul.f32 1.442695, %v639_v57 }
 0x2b5   : > { %v650_v61 = vmul.f32 1.442695, %v638_v59  ;;  %v931_v62 = vpop.f32.mrb[6].mxu1 }
 0x2b6   : > { %1045 = vpow2.f32 %v652_v60  ;;  %v641_v63 = vsub.f32 0.0, %v931_v62  ;;  %v625_v0 = vpop.f32.mrb[7].mxu1 }
 0x2b7   : > { %1047 = vpow2.f32 %v650_v61  ;;  %v640_v1 = vsub.f32 0.0, %v625_v0 }
 0x2b8   : > { %v1038_v2 = vpop.eup %1037  ;;  %v656_v3 = vmul.f32 1.442695, %v641_v63 }
 0x2b9   : > { %v1040_v4 = vpop.eup %1039  ;;  %v659_v5 = vadd.f32 1.0, %v1038_v2  ;;  %v654_v6 = vmul.f32 1.442695, %v640_v1 }
 0x2ba   : > { %v658_v7 = vadd.f32 1.0, %v1040_v4  ;;  %1049 = vpow2.f32 %v656_v3 }
 0x2bb   : > { %1051 = vrcp.f32 %v659_v5 }
 0x2bc   : > { %v1042_v8 = vpop.eup %1041  ;;  %1053 = vrcp.f32 %v658_v7 }
 0x2bd   : > { %v1044_v9 = vpop.eup %1043  ;;  %v661_v10 = vadd.f32 1.0, %v1042_v8  ;;  %1055 = vpow2.f32 %v654_v6 }
 0x2be   : > { %v660_v11 = vadd.f32 1.0, %v1044_v9 }
 0x2bf   : > { %1057 = vrcp.f32 %v661_v10 }
 0x2c0   : > { %v1046_v12 = vpop.eup %1045  ;;  %1059 = vrcp.f32 %v660_v11 }
 0x2c1   : > { %v1048_v13 = vpop.eup %1047  ;;  %v663_v14 = vadd.f32 1.0, %v1046_v12 }
 0x2c2   : > { %v662_v15 = vadd.f32 1.0, %v1048_v13 }
 0x2c3   : > { %1061 = vrcp.f32 %v663_v14 }
 0x2c4   : > { %v1050_v16 = vpop.eup %1049  ;;  %1063 = vrcp.f32 %v662_v15 }
 0x2c5   : > { %v1052_v17 = vpop.eup %1051  ;;  %v665_v18 = vadd.f32 1.0, %v1050_v16 }
 0x2c6   : > { %v1054_v19 = vpop.eup %1053  ;;  %684 = vst.msk [vmem:[%s207_s21 + $0x8] sm:$0xff] %vm682_vm1, %v1052_v17 }
 0x2c7   : > { %v1056_v20 = vpop.eup %1055  ;;  %683 = vst.msk [vmem:[%s207_s21] sm:$0xff] %vm682_vm1, %v1054_v19  ;;  %1065 = vrcp.f32 %v665_v18 }
 0x2c8   : > { %v664_v21 = vadd.f32 1.0, %v1056_v20 }
 0x2c9   : > { %v1058_v22 = vpop.eup %1057 }
 0x2ca   : > { %v1060_v23 = vpop.eup %1059  ;;  %686 = vst.msk [vmem:[%s207_s21 + $0x18] sm:$0xff] %vm682_vm1, %v1058_v22  ;;  %1067 = vrcp.f32 %v664_v21 }
 0x2cb   : > { %685 = vst.msk [vmem:[%s207_s21 + $0x10] sm:$0xff] %vm682_vm1, %v1060_v23 }
 0x2cd   : > { %v1062_v24 = vpop.eup %1061 }
 0x2ce   : > { %v1064_v25 = vpop.eup %1063  ;;  %688 = vst.msk [vmem:[%s207_s21 + $0x28] sm:$0xff] %vm682_vm1, %v1062_v24 }
 0x2cf   : > { %687 = vst.msk [vmem:[%s207_s21 + $0x20] sm:$0xff] %vm682_vm1, %v1064_v25 }
 0x2d1   : > { %v1066_v26 = vpop.eup %1065 }
 0x2d2   : > { %690 = vst.msk [vmem:[%s207_s21 + $0x38] sm:$0xff] %vm682_vm1, %v1066_v26 }
 0x2d4   : > { %v1068_v27 = vpop.eup %1067 }
 0x2d5   : > { %689 = vst.msk [vmem:[%s207_s21 + $0x30] sm:$0xff] %vm682_vm1, %v1068_v27 }
 0x2d6 PF: > { %s16_s17 = sadd.s32 1, %s1149_s17   ;;  %s1419_s12 = smov %s1133_s13 }
 0x2d7   : > { %p13_p9 = scmp.ge.s32.totalorder %s16_s17, 4   ;;  %s1420_s13 = smov %s1137_s14 }
 0x2d8   : > { %s1421_s14 = smov %s1223_s24  ;;  %s1422_s15 = smov %s1145_s16 }
 0x2d9   : > { %s1423_s16 = smov %s1425_s19  ;;  %15 = sbr.rel (!%p13_p9) target bundleno = 4 (0x4), region = 80 }
 0x2e0   :  { %712 = vsyncpa [#allocation4], 1 }
 0x2e1   :  { %714 = vsyncpa [#allocation4 + $0x1], 1 }

</bundles_post_ra>
